<compile_context>
chip_gen: v7x
topology: tpu7x:2x2x1
jax: 0.10.0
libtpu: 0.0.40
codegen_flags: <defaults>
</compile_context>

<pallas_src>
from functools import partial

import jax
import jax.numpy as jnp
from jax.experimental import pallas as pl
from jax.experimental.pallas import tpu as pltpu


def simple_gcn_kernel(a_ref, x_ref, w1_ref, b1_ref, mask_ref, w2_ref, b2_ref,
                      out_ref, pooled_ref, *, num_graphs):
    # --- GCNConv, reordered contraction:  H = relu((A_hat @ X) @ W1 + b1) ----
    # a_ref/x_ref/w1_ref are bf16 (MXU-native); accumulation is f32.
    ax = jnp.dot(a_ref[...], x_ref[...], preferred_element_type=jnp.float32)      # [N, F_in]  f32
    h = jnp.dot(ax.astype(jnp.bfloat16), w1_ref[...],
                preferred_element_type=jnp.float32) + b1_ref[...]                 # [N, H1]    f32
    h = jnp.maximum(h, 0.0)                                                       # ReLU (f32 on VPU)

    # Dropout(p=0.5) is identity in eval mode.
    # TODO(synk): training-mode dropout would use pltpu.prng_seed / pltpu.prng_random_bits.

    # --- global_max_pool over the `batch` assignment --------------------------
    # Precondition: every graph has >= 1 node (an all-zero mask column would pool to 0, not -inf).
    # mask_ref is node-major [N, G]; mask_ref[:, g:g+1] is a cheap lane slice (N stays on sublanes).
    # Since h >= 0, masked max == max(h * mask): one vmul + one sublane reduce per graph, no sentinel.
    for g in range(num_graphs):                                                   # static, tiny G
        col = mask_ref[:, g:g + 1]                                                # [N, 1] f32 {0,1}
        pooled_ref[g:g + 1, :] = jnp.max(h * col, axis=0, keepdims=True)          # [1, H1]

    # --- final Linear:  out = pooled @ W2 + b2 --------------------------------
    out_ref[...] = (jnp.dot(pooled_ref[...].astype(jnp.bfloat16), w2_ref[...],
                            preferred_element_type=jnp.float32) + b2_ref[...])


def _round_up(v, m=128):
    return ((v + m - 1) // m) * m


def simple_gcn_forward(a_hat, x, w1, b1, pool_mask, w2, b2):
    n, f_in = x.shape
    h1 = w1.shape[1]
    g = pool_mask.shape[0]
    f_out = w2.shape[1]

    # Lane-pad every matmul-facing dim to a multiple of 128 (zero padding keeps the math exact).
    n_p, fi_p, h1_p, fo_p = (_round_up(d) for d in (n, f_in, h1, f_out))

    def pad2(arr, rows, cols):
        return jnp.pad(arr, ((0, rows - arr.shape[0]), (0, cols - arr.shape[1])))

    a_p = pad2(a_hat, n_p, n_p).astype(jnp.bfloat16)                 # [N_p, N_p]   bf16
    x_p = pad2(x, n_p, fi_p).astype(jnp.bfloat16)                    # [N_p, Fi_p]  bf16
    w1_p = pad2(w1, fi_p, h1_p).astype(jnp.bfloat16)                 # [Fi_p, H1_p] bf16
    b1_p = pad2(b1, 1, h1_p).astype(jnp.float32)                     # [1, H1_p]    f32
    w2_p = pad2(w2, h1_p, fo_p).astype(jnp.bfloat16)                 # [H1_p, Fo_p] bf16
    b2_p = pad2(b2, 1, fo_p).astype(jnp.float32)                     # [1, Fo_p]    f32
    mask_p = pad2(pool_mask.T.astype(jnp.float32), n_p, g)           # node-major [N_p, G] f32

    vmem = pl.BlockSpec(memory_space=pltpu.MemorySpace.VMEM)
    out_p = pl.pallas_call(
        partial(simple_gcn_kernel, num_graphs=g),
        out_shape=jax.ShapeDtypeStruct((g, fo_p), jnp.float32),
        in_specs=[vmem] * 7,
        out_specs=vmem,
        scratch_shapes=[pltpu.VMEM((g, h1_p), jnp.float32)],         # pooled rows, no concat
    )(a_p, x_p, w1_p, b1_p, mask_p, w2_p, b2_p)

    return out_p[:, :f_out]                                          # slice off lane padding


if __name__ == "__main__":
    key = jax.random.PRNGKey(0)
    N, F_IN, H1, F_OUT, G = 16, 8, 32, 4, 2

    # --- deterministic graph: a bidirectional ring inside each of G graphs ---
    src, dst = [], []
    n_per = N // G
    for gg in range(G):
        base = gg * n_per
        for i in range(n_per):
            a_, b_ = base + i, base + (i + 1) % n_per
            src += [a_, b_]
            dst += [b_, a_]
    edge_index = jnp.array([src, dst], dtype=jnp.int32)            # [2, E]
    batch = jnp.repeat(jnp.arange(G, dtype=jnp.int32), n_per)      # [N]

    # --- deterministic parameters (synthetic init, shapes from the module) ---
    k1, k2, k3, k4 = jax.random.split(key, 4)
    w1 = jax.random.uniform(k1, (F_IN, H1), jnp.float32, -0.3, 0.3)   # GCNConv weight (glorot-style)
    b1 = jnp.zeros((1, H1), jnp.float32)                              # GCNConv bias (init zeros)
    w2 = jax.random.uniform(k2, (H1, F_OUT), jnp.float32, -0.4, 0.4)  # linear.weight.T (kaiming-style)
    b2 = jax.random.uniform(k3, (1, F_OUT), jnp.float32, -0.1, 0.1)   # linear.bias
    x = jax.random.normal(k4, (N, F_IN), jnp.float32)

    # --- glue: dense normalized adjacency with self-loops (PyG GCNConv norm) -
    self_loops = jnp.arange(N, dtype=jnp.int32)
    row = jnp.concatenate([edge_index[0], self_loops])
    col = jnp.concatenate([edge_index[1], self_loops])
    deg = jnp.zeros((N,), jnp.float32).at[col].add(1.0)
    dinv = jnp.where(deg > 0, jax.lax.rsqrt(deg), 0.0)
    norm = dinv[row] * dinv[col]
    a_hat = jnp.zeros((N, N), jnp.float32).at[col, row].add(norm)

    # one-hot pooling mask [G, N] from the batch vector
    pool_mask = (batch[None, :] == jnp.arange(G, dtype=jnp.int32)[:, None]).astype(jnp.float32)

    out = simple_gcn_forward(a_hat, x, w1, b1, pool_mask, w2, b2)
    out = jax.block_until_ready(out)

    # --- pure-JAX reference check (mirrors the bf16-matmul / f32-accumulate precision) ----------
    a_bf, x_bf = a_hat.astype(jnp.bfloat16), x.astype(jnp.bfloat16)
    w1_bf, w2_bf = w1.astype(jnp.bfloat16), w2.astype(jnp.bfloat16)
    ax_ref = jnp.dot(a_bf, x_bf, preferred_element_type=jnp.float32)
    h_ref = jnp.maximum(
        jnp.dot(ax_ref.astype(jnp.bfloat16), w1_bf, preferred_element_type=jnp.float32) + b1, 0.0)
    pooled_ref = jnp.stack(
        [jnp.max(h_ref * pool_mask[gg][:, None], axis=0) for gg in range(G)])   # h >= 0 -> mul-mask ok
    ref = jnp.dot(pooled_ref.astype(jnp.bfloat16), w2_bf,
                  preferred_element_type=jnp.float32) + b2

    assert out.shape == (G, F_OUT)
    assert jnp.allclose(out, ref, atol=2e-2, rtol=2e-2), (out, ref)

    print("KERNEL_OK")
</pallas_src>

<mosaic_0001>
module attributes {stable_mosaic.version = 11 : i64} {
  func.func @simple_gcn_kernel(%arg0: memref<128x128xbf16, #tpu.memory_space<vmem>>, %arg1: memref<128x128xbf16, #tpu.memory_space<vmem>>, %arg2: memref<128x128xbf16, #tpu.memory_space<vmem>>, %arg3: memref<1x128xf32, #tpu.memory_space<vmem>>, %arg4: memref<128x2xf32, #tpu.memory_space<vmem>>, %arg5: memref<128x128xbf16, #tpu.memory_space<vmem>>, %arg6: memref<1x128xf32, #tpu.memory_space<vmem>>, %arg7: memref<2x128xf32, #tpu.memory_space<vmem>>, %arg8: memref<2x128xf32, #tpu.memory_space<vmem>>) attributes {dimension_semantics = [], scalar_prefetch = 0 : i64, scratch_operands = 1 : i64, tpu.core_type = #tpu.core_type<tc>} {
    %c0 = arith.constant 0 : index
    %c0_0 = arith.constant 0 : index
    %0 = vector.load %arg0[%c0, %c0_0] : memref<128x128xbf16, #tpu.memory_space<vmem>>, vector<128x128xbf16>
    %c0_1 = arith.constant 0 : index
    %c0_2 = arith.constant 0 : index
    %1 = vector.load %arg1[%c0_1, %c0_2] : memref<128x128xbf16, #tpu.memory_space<vmem>>, vector<128x128xbf16>
    %cst = arith.constant dense<0.000000e+00> : vector<128x128xf32>
    %2 = tpu.matmul %0, %1, %cst {dimension_numbers = #tpu.dot_dimension_numbers<[1], [0], [0], [1], [0, 0, 1, 1], [], []>} : vector<128x128xbf16>, vector<128x128xbf16>, vector<128x128xf32> -> vector<128x128xf32>
    %3 = arith.truncf %2 : vector<128x128xf32> to vector<128x128xbf16>
    %c0_3 = arith.constant 0 : index
    %c0_4 = arith.constant 0 : index
    %4 = vector.load %arg2[%c0_3, %c0_4] : memref<128x128xbf16, #tpu.memory_space<vmem>>, vector<128x128xbf16>
    %cst_5 = arith.constant dense<0.000000e+00> : vector<128x128xf32>
    %5 = tpu.matmul %3, %4, %cst_5 {dimension_numbers = #tpu.dot_dimension_numbers<[1], [0], [0], [1], [0, 0, 1, 1], [], []>} : vector<128x128xbf16>, vector<128x128xbf16>, vector<128x128xf32> -> vector<128x128xf32>
    %c0_6 = arith.constant 0 : index
    %c0_7 = arith.constant 0 : index
    %6 = vector.load %arg3[%c0_6, %c0_7] : memref<1x128xf32, #tpu.memory_space<vmem>>, vector<1x128xf32>
    %7 = vector.broadcast %6 : vector<1x128xf32> to vector<128x128xf32>
    %8 = arith.addf %5, %7 : vector<128x128xf32>
    %cst_8 = arith.constant 0.000000e+00 : f32
    %9 = vector.broadcast %cst_8 : f32 to vector<128x128xf32>
    %10 = arith.maximumf %8, %9 : vector<128x128xf32>
    %c0_9 = arith.constant 0 : index
    %c0_10 = arith.constant 0 : index
    %11 = vector.load %arg4[%c0_9, %c0_10] : memref<128x2xf32, #tpu.memory_space<vmem>>, vector<128x1xf32>
    %12 = vector.broadcast %11 : vector<128x1xf32> to vector<128x128xf32>
    %13 = arith.mulf %10, %12 : vector<128x128xf32>
    %cst_11 = arith.constant dense<0xFF800000> : vector<128xf32>
    %14 = vector.multi_reduction <maximumf>, %13, %cst_11 [0] : vector<128x128xf32> to vector<128xf32>
    %15 = vector.shape_cast %14 : vector<128xf32> to vector<1x128xf32>
    %c0_12 = arith.constant 0 : index
    %c0_13 = arith.constant 0 : index
    %16 = vector.load %arg8[%c0_12, %c0_13] : memref<2x128xf32, #tpu.memory_space<vmem>>, vector<1x128xf32>
    tpu.vector_store %arg8[%c0_12, %c0_13], %15 {strides = array<i32>} : memref<2x128xf32, #tpu.memory_space<vmem>>, vector<1x128xf32>,
    %c0_14 = arith.constant 0 : index
    %c1 = arith.constant 1 : index
    %17 = vector.load %arg4[%c0_14, %c1] : memref<128x2xf32, #tpu.memory_space<vmem>>, vector<128x1xf32>
    %18 = vector.broadcast %17 : vector<128x1xf32> to vector<128x128xf32>
    %19 = arith.mulf %10, %18 : vector<128x128xf32>
    %cst_15 = arith.constant dense<0xFF800000> : vector<128xf32>
    %20 = vector.multi_reduction <maximumf>, %19, %cst_15 [0] : vector<128x128xf32> to vector<128xf32>
    %21 = vector.shape_cast %20 : vector<128xf32> to vector<1x128xf32>
    %c1_16 = arith.constant 1 : index
    %c0_17 = arith.constant 0 : index
    %22 = vector.load %arg8[%c1_16, %c0_17] : memref<2x128xf32, #tpu.memory_space<vmem>>, vector<1x128xf32>
    tpu.vector_store %arg8[%c1_16, %c0_17], %21 {strides = array<i32>} : memref<2x128xf32, #tpu.memory_space<vmem>>, vector<1x128xf32>,
    %c0_18 = arith.constant 0 : index
    %c0_19 = arith.constant 0 : index
    %23 = vector.load %arg8[%c0_18, %c0_19] : memref<2x128xf32, #tpu.memory_space<vmem>>, vector<2x128xf32>
    %24 = arith.truncf %23 : vector<2x128xf32> to vector<2x128xbf16>
    %c0_20 = arith.constant 0 : index
    %c0_21 = arith.constant 0 : index
    %25 = vector.load %arg5[%c0_20, %c0_21] : memref<128x128xbf16, #tpu.memory_space<vmem>>, vector<128x128xbf16>
    %cst_22 = arith.constant dense<0.000000e+00> : vector<2x128xf32>
    %26 = tpu.matmul %24, %25, %cst_22 {dimension_numbers = #tpu.dot_dimension_numbers<[1], [0], [0], [1], [0, 0, 1, 1], [], []>} : vector<2x128xbf16>, vector<128x128xbf16>, vector<2x128xf32> -> vector<2x128xf32>
    %c0_23 = arith.constant 0 : index
    %c0_24 = arith.constant 0 : index
    %27 = vector.load %arg6[%c0_23, %c0_24] : memref<1x128xf32, #tpu.memory_space<vmem>>, vector<1x128xf32>
    %28 = vector.broadcast %27 : vector<1x128xf32> to vector<2x128xf32>
    %29 = arith.addf %26, %28 : vector<2x128xf32>
    %c0_25 = arith.constant 0 : index
    %c0_26 = arith.constant 0 : index
    %30 = vector.load %arg7[%c0_25, %c0_26] : memref<2x128xf32, #tpu.memory_space<vmem>>, vector<2x128xf32>
    tpu.vector_store %arg7[%c0_25, %c0_26], %29 {strides = array<i32>} : memref<2x128xf32, #tpu.memory_space<vmem>>, vector<2x128xf32>,
    return
  }
}

</mosaic_0001>

<bundles_post_ra>
// kernel: tpu_custom_call.1
= control target key start
LH: loop header
LB: loop body
LE: loop exit
PB: predicated region body
PF: predicated region fallthrough
CT: control target
= control target key end

     0   :  { %12 = vsyncpa [#allocation4], 0  ;;  %s1389_s0 = inlined_call_operand.vmem [shape: bf16[128,128], index: 0, kind: input, shape index: {}]   ;;  %s1390_s1 = inlined_call_operand.vmem [shape: bf16[128,128], index: 1, kind: input, shape index: {}]   ;;  %s1391_s2 = inlined_call_operand.hbm [shape: bf16[128,128], index: 2, kind: input, shape index: {}]   ;;  %s1392_s3 = inlined_call_operand.vmem [shape: f32[1,128], index: 3, kind: input, shape index: {}]   ;;  %s1393_s4 = inlined_call_operand.vmem [shape: f32[128,2], index: 4, kind: input, shape index: {}]   ;;  %s1394_s5 = inlined_call_operand.hbm [shape: bf16[128,128], index: 5, kind: input, shape index: {}]   ;;  %s1395_s6 = inlined_call_operand.vmem [shape: f32[1,128], index: 6, kind: input, shape index: {}]   ;;  %s1396_s7 = inlined_call_operand.hbm [shape: f32[2,128], index: 7, kind: output, shape index: {}]  }
   0x1   :  { %13 = vsyncpa [#allocation7], 0 }
   0x2   :  { %14 = vsyncpa [#allocation5], 0  ;;  %s1151_s24 = smov [#allocation3]   ;;  %s1079_s28 = scalar_lea.hbm %s1391_s2, 1024 }
   0x3   :  { %s24_s25 = sshll.u32 %s1151_s24, 4  ;;  %p1080_p0 = scmp.ne.s32.totalorder %s1391_s2, %s1079_s28  ;;  %s25_s25 = int_to_ptr.vmem [resolvable:$true] %s24_s25 }
   0x4   :  { %p1083_p1 = scmp.lt.u32.totalorder %s1079_s28, %s1391_s2 }
   0x6   :  { %p1085_p2 = pnand %p1083_p1, %p1080_p0 }
   0x8   :  { %1088 = shalt.err (!%p1085_p2)
}
   0x9   :  { %s1089_s10 = scalar_lea.vmem %s25_s25, 1024  ;;  %p1094_p4 = scmp.lt.s32.totalorder %s25_s25, %s25_s25 }
   0xa   :  { %p1090_p3 = scmp.ne.s32.totalorder %s25_s25, %s1089_s10  ;;  %p1095_p5 = scmp.lt.s32.totalorder %s1089_s10, %s1089_s10 }
   0xc   :  { %p1096_p6 = por %p1095_p5, %p1094_p4 }
   0xe   :  { %p1097_p7 = pnand %p1096_p6, %p1090_p3 }
  0x10   :  { %1100 = shalt.err (!%p1097_p7)
}
  0x11   :  { %s1152_s11 = smov 64   ;;  %s1153_s12 = smov 4  }
  0x12   :  { %30 = dma.hbm_to_vmem [thread:$0]  %s1391_s2, 1024, %s25_s25, [#allocation4], %s1152_s11, %s1152_s11, %s1153_s12  }
  0x13   :  { %s1154_s15 = smov [#allocation6]   ;;  %s1101_s19 = scalar_lea.hbm %s1394_s5, 1024 }
  0x14   :  { %s40_s16 = sshll.u32 %s1154_s15, 4  ;;  %p1102_p8 = scmp.ne.s32.totalorder %s1394_s5, %s1101_s19  ;;  %s41_s16 = int_to_ptr.vmem [resolvable:$true] %s40_s16 }
  0x15   :  { %p1105_p9 = scmp.lt.u32.totalorder %s1101_s19, %s1394_s5 }
  0x17   :  { %p1107_p10 = pnand %p1105_p9, %p1102_p8 }
  0x19   :  { %1110 = shalt.err (!%p1107_p10)
}
  0x1a   :  { %s1111_s24 = scalar_lea.vmem %s41_s16, 1024  ;;  %p1116_p12 = scmp.lt.s32.totalorder %s41_s16, %s41_s16 }
  0x1b   :  { %p1112_p11 = scmp.ne.s32.totalorder %s41_s16, %s1111_s24  ;;  %p1117_p13 = scmp.lt.s32.totalorder %s1111_s24, %s1111_s24 }
  0x1d   :  { %p1118_p0 = por %p1117_p13, %p1116_p12 }
  0x1f   :  { %p1119_p1 = pnand %p1118_p0, %p1112_p11 }
  0x21   :  { %1122 = shalt.err (!%p1119_p1)
}
  0x22   :  { %46 = dma.hbm_to_vmem [thread:$0]  %s1394_s5, 1024, %s41_s16, [#allocation7], %s1152_s11, %s1152_s11, %s1153_s12  }
  0x23   :  { %1145 = dma.done.wait [#allocation4], 1024  }
  0x24   :  { %1146 = vsyncadd [#allocation4], 4294966272 }
  0x25   :  { %1147 = dma.done.wait [#allocation7], 1024  }
  0x26   :  { %1148 = vsyncadd [#allocation7], 4294966272  ;;  %v1047_v0 = vld [vmem:[%s1390_s1] sm:$0xff]   ;;  %v1048_v1 = vld [vmem:[%s1390_s1 + $0x8] sm:$0xff]   ;;  %v1155_v26 = vmov 0   ;;  %v1156_v34 = vmov 1  }
  0x27   :  { %946 = vmatprep.subr.bf16.mxu0 %v1047_v0  ;;  %v1049_v2 = vld [vmem:[%s1390_s1 + $0x10] sm:$0xff]   ;;  %v1050_v3 = vld [vmem:[%s1390_s1 + $0x18] sm:$0xff]   ;;  %v1055_v4 = vld [vmem:[%s1389_s0] sm:$0xff]   ;;  %1040 = vset.pattern.permute.xlu1 %v1155_v26  ;;  %vm1158_vm0 = vmmov 0   ;;  %s1159_s14 = smov [#allocation8]  }
  0x28   :  { %947 = vmatpush3.bf16.msra.mxu0 %v1047_v0  ;;  %962 = vmatprep.mubr.bf16.mxu0 %v1055_v4  ;;  %v1051_v5 = vld [vmem:[%s1390_s1 + $0x20] sm:$0xff]   ;;  %v1052_v6 = vld [vmem:[%s1390_s1 + $0x28] sm:$0xff]   ;;  %v1053_v9 = vld [vmem:[%s1390_s1 + $0x30] sm:$0xff]   ;;  %s861_s15 = sshll.u32 %s1159_s14, 4  ;;  %s862_s15 = int_to_ptr.vmem [resolvable:$true] %s861_s15 }
  0x29   :  { %948 = vmatprep.subr.bf16.mxu0 %v1048_v1  ;;  %v1063_v7 = vld [vmem:[#allocation3] sm:$0xff]   ;;  %v1064_v8 = vld [vmem:[#allocation3 + $0x8] sm:$0xff]   ;;  %v1065_v10 = vld [vmem:[#allocation3 + $0x10] sm:$0xff]   ;;  %1039 = vset.pattern.permute.xlu0 %v1155_v26  ;;  %s1123_s16 = scalar_lea.vmem %s862_s15, 32  ;;  %p1128_p3 = scmp.lt.s32.totalorder %s862_s15, %s862_s15 }
  0x2a   :  { %978 = vmatprep.subr.bf16.mxu1 %v1063_v7  ;;  %v1054_v11 = vld [vmem:[%s1390_s1 + $0x38] sm:$0xff]   ;;  %v1067_v13 = vld [vmem:[#allocation3 + $0x20] sm:$0xff]   ;;  %v1057_v15 = vld [vmem:[%s1389_s0 + $0x10] sm:$0xff]   ;;  %p1124_p2 = scmp.ne.s32.totalorder %s862_s15, %s1123_s16  ;;  %p1129_p4 = scmp.lt.s32.totalorder %s1123_s16, %s1123_s16 }
  0x2b   :  { %979 = vmatpush3.bf16.msra.mxu1 %v1063_v7  ;;  %v1066_v12 = vld [vmem:[#allocation3 + $0x18] sm:$0xff]   ;;  %v1056_v14 = vld [vmem:[%s1389_s0 + $0x8] sm:$0xff]   ;;  %v1069_v17 = vld [vmem:[#allocation3 + $0x30] sm:$0xff]  }
  0x2c   :  { %949 = vmatpush3.bf16.msra.mxu0 %v1048_v1  ;;  %980 = vmatprep.subr.bf16.mxu1 %v1064_v8  ;;  %v1068_v16 = vld [vmem:[#allocation3 + $0x28] sm:$0xff]   ;;  %v1058_v18 = vld [vmem:[%s1389_s0 + $0x18] sm:$0xff]   ;;  %v1059_v19 = vld [vmem:[%s1389_s0 + $0x20] sm:$0xff]   ;;  %p1130_p5 = por %p1129_p4, %p1128_p3 }
  0x2d   :  { %950 = vmatprep.subr.bf16.mxu0 %v1049_v2  ;;  %v1060_v20 = vld [vmem:[%s1389_s0 + $0x28] sm:$0xff]   ;;  %v1061_v21 = vld [vmem:[%s1389_s0 + $0x30] sm:$0xff]   ;;  %v1062_v22 = vld [vmem:[%s1389_s0 + $0x38] sm:$0xff]  }
  0x2e   :  { %v1070_v23 = vld [vmem:[#allocation3 + $0x38] sm:$0xff]   ;;  %v475_v24 = vld [vmem:[%s1393_s4 + $0x10] sm:$0xff]  ;;  %v474_v28 = vld [vmem:[%s1393_s4 + $0x8] sm:$0xff]  ;;  %p1131_p6 = pnand %p1130_p5, %p1124_p2 }
  0x2f   :  { %981 = vmatpush3.bf16.msra.mxu1 %v1064_v8  ;;  %v473_v25 = vld [vmem:[%s1393_s4] sm:$0xff]  ;;  %501 = vperm.xlu1 %1040, %v475_v24   ;;  %v476_v27 = vld [vmem:[%s1393_s4 + $0x18] sm:$0xff]  ;;  %v478_v29 = vld [vmem:[%s1393_s4 + $0x28] sm:$0xff] }
  0x30   :  { %951 = vmatpush3.bf16.msra.mxu0 %v1049_v2  ;;  %982 = vmatprep.subr.bf16.mxu1 %v1065_v10  ;;  %v477_v30 = vld [vmem:[%s1393_s4 + $0x20] sm:$0xff]  ;;  %v480_v31 = vld [vmem:[%s1393_s4 + $0x38] sm:$0xff]  ;;  %v479_v32 = vld [vmem:[%s1393_s4 + $0x30] sm:$0xff] }
  0x31   :  { %952 = vmatprep.subr.bf16.mxu0 %v1050_v3  ;;  %491 = vperm.xlu0 %1039, %v473_v25   ;;  %v482_v33 = vld [vmem:[%s1393_s4 + $0x48] sm:$0xff]  ;;  %v481_v36 = vld [vmem:[%s1393_s4 + $0x40] sm:$0xff]  ;;  %v483_v37 = vld [vmem:[%s1393_s4 + $0x50] sm:$0xff] }
  0x32   :  { %v486_v35 = vld [vmem:[%s1393_s4 + $0x68] sm:$0xff]  ;;  %v484_v38 = vld [vmem:[%s1393_s4 + $0x58] sm:$0xff]  ;;  %v619_v39 = vld [vmem:[%s1393_s4 + $0x60] sm:$0xff] }
  0x33   :  { %983 = vmatpush3.bf16.msra.mxu1 %v1065_v10  ;;  %506 = vperm.xlu1 %1040, %v476_v27   ;;  %v622_v40 = vld [vmem:[%s1393_s4 + $0x78] sm:$0xff]  ;;  %v487_v41 = vld [vmem:[%s1393_s4 + $0x70] sm:$0xff]  ;;  %v1071_v2 = vld [vmem:[#allocation6] sm:$0xff]  }
  0x34   :  { %953 = vmatpush3.bf16.msra.mxu0 %v1050_v3  ;;  %984 = vmatprep.subr.bf16.mxu1 %v1066_v12  ;;  %v1157_v3 = vmov 0.0   ;;  %v1072_v4 = vld [vmem:[#allocation6 + $0x8] sm:$0xff]   ;;  %v1075_v7 = vld [vmem:[#allocation6 + $0x20] sm:$0xff]   ;;  %v1078_v10 = vld [vmem:[#allocation6 + $0x38] sm:$0xff]  }
  0x35   :  { %954 = vmatprep.subr.bf16.mxu0 %v1051_v5  ;;  %496 = vperm.xlu0 %1039, %v474_v28   ;;  %v1076_v8 = vld [vmem:[#allocation6 + $0x28] sm:$0xff]  }
  0x37   :  { %985 = vmatpush3.bf16.msra.mxu1 %v1066_v12  ;;  %516 = vperm.xlu1 %1040, %v478_v29  }
  0x38   :  { %955 = vmatpush3.bf16.msra.mxu0 %v1051_v5  ;;  %986 = vmatprep.subr.bf16.mxu1 %v1067_v13  ;;  %v1073_v5 = vld [vmem:[#allocation6 + $0x10] sm:$0xff]  }
  0x39   :  { %956 = vmatprep.subr.bf16.mxu0 %v1052_v6  ;;  %511 = vperm.xlu0 %1039, %v477_v30  }
  0x3b   :  { %987 = vmatpush3.bf16.msra.mxu1 %v1067_v13  ;;  %526 = vperm.xlu1 %1040, %v480_v31  }
  0x3c   :  { %957 = vmatpush3.bf16.msra.mxu0 %v1052_v6  ;;  %988 = vmatprep.subr.bf16.mxu1 %v1068_v16  ;;  %v1074_v6 = vld [vmem:[#allocation6 + $0x18] sm:$0xff]  }
  0x3d   :  { %958 = vmatprep.subr.bf16.mxu0 %v1053_v9  ;;  %521 = vperm.xlu0 %1039, %v479_v32  }
  0x3f   :  { %989 = vmatpush3.bf16.msra.mxu1 %v1068_v16  ;;  %1041 = vset.pattern.permute.xlu1 %v1156_v34 }
  0x40   :  { %959 = vmatpush3.bf16.msra.mxu0 %v1053_v9  ;;  %990 = vmatprep.subr.bf16.mxu1 %v1069_v17  ;;  %v1077_v9 = vld [vmem:[#allocation6 + $0x30] sm:$0xff]  }
  0x41   :  { %960 = vmatprep.subr.bf16.mxu0 %v1054_v11  ;;  %536 = vperm.xlu0 %1039, %v482_v33  }
  0x42   :  { %630 = vperm.xlu1 %1041, %v474_v28  }
  0x43   :  { %991 = vmatpush3.bf16.msra.mxu1 %v1069_v17 }
  0x44   :  { %961 = vmatpush3.bf16.msra.mxu0 %v1054_v11  ;;  %992 = vmatprep.subr.bf16.mxu1 %v1070_v23 }
  0x45   :  { %556 = vperm.xlu0 %1039, %v486_v35   ;;  %1010 = vmatprep.subr.bf16.mxu0 %v1157_v3 }
  0x46   :  { %635 = vperm.xlu1 %1041, %v475_v24  }
  0x47   :  { %963 = vmatmul.mubr.bf16.vlgmr.msra.gmra.mrb[0].mxu0 %v1056_v14  ;;  %993 = vmatpush3.bf16.msra.mxu1 %v1070_v23 }
  0x48   :  { %966 = vmatprep.mubr.bf16.mxu0 %v1057_v15  ;;  %1011 = vmatpush3.bf16.msra.mxu0 %v1071_v2 }
  0x49   :  { %1045 = vset.pattern.permute.xlu0 %v1156_v34  ;;  %1012 = vmatprep.subr.bf16.mxu0 %v1157_v3 }
  0x4a   :  { %645 = vperm.xlu1 %1041, %v477_v30   ;;  %625 = vperm.xlu0 %1045, %v473_v25  }
  0x4c   :  { %1013 = vmatpush3.bf16.msra.mxu0 %v1072_v4 }
  0x4d   :  { %1014 = vmatprep.subr.bf16.mxu0 %v1157_v3 }
  0x4e   :  { %655 = vperm.xlu1 %1041, %v479_v32   ;;  %640 = vperm.xlu0 %1045, %v476_v27  }
  0x4f   :  { %967 = vmatmul.mubr.bf16.gmra.mrb[4].mxu0 %v1058_v18 }
  0x50   :  { %970 = vmatprep.mubr.bf16.mxu0 %v1059_v19  ;;  %1015 = vmatpush3.bf16.msra.mxu0 %v1073_v5 }
  0x51   :  { %1016 = vmatprep.subr.bf16.mxu0 %v1157_v3 }
  0x52   :  { %1042 = vset.pattern.permute.xlu1 %v1155_v26  ;;  %650 = vperm.xlu0 %1045, %v478_v29  }
  0x53   :  { %531 = vperm.xlu1 %1042, %v481_v36  }
  0x54   :  { %1017 = vmatpush3.bf16.msra.mxu0 %v1074_v6 }
  0x55   :  { %1018 = vmatprep.subr.bf16.mxu0 %v1157_v3 }
  0x56   :  { %660 = vperm.xlu0 %1045, %v480_v31   ;;  %v1337_v31 = vld [vmem:[%s1392_s3] ss:$0 sm:$0xff] }
  0x57   :  { %971 = vmatmul.mubr.bf16.gmra.mrb[8].mxu0 %v1060_v20  ;;  %541 = vperm.xlu1 %1042, %v483_v37  }
  0x58   :  { %974 = vmatprep.mubr.bf16.mxu0 %v1061_v21  ;;  %1019 = vmatpush3.bf16.msra.mxu0 %v1075_v7 }
  0x59   :  { %1020 = vmatprep.subr.bf16.mxu0 %v1157_v3 }
  0x5a   :  { %665 = vperm.xlu0 %1045, %v481_v36  }
  0x5b   :  { %546 = vperm.xlu1 %1042, %v484_v38  }
  0x5c   :  { %1021 = vmatpush3.bf16.msra.mxu0 %v1076_v8 }
  0x5d   :  { %1022 = vmatprep.subr.bf16.mxu0 %v1157_v3 }
  0x5e   :  { %680 = vperm.xlu0 %1045, %v484_v38  }
  0x5f   :  { %975 = vmatmul.mubr.bf16.gmra.mrb[12].mxu0 %v1062_v22  ;;  %1043 = vset.pattern.permute.xlu1 %v1156_v34 }
  0x60   :  { %670 = vperm.xlu1 %1043, %v482_v33   ;;  %1026 = vmatprep.mubr.msk.bf16.mxu0 %vm1158_vm0, %v1157_v3 }
  0x61   :  { %1023 = vmatpush3.bf16.msra.mxu0 %v1077_v9 }
  0x62   :  { %685 = vperm.xlu0 %1045, %v619_v39   ;;  %1024 = vmatprep.subr.bf16.mxu0 %v1157_v3 }
  0x64   :  { %675 = vperm.xlu1 %1043, %v483_v37  }
  0x65   :  { %1025 = vmatpush3.bf16.msra.mxu0 %v1078_v10 }
  0x66   :  { %700 = vperm.xlu0 %1045, %v622_v40  }
  0x68   :  { %1044 = vset.pattern.permute.xlu1 %v1155_v26 }
  0x69   :  { %551 = vperm.xlu1 %1044, %v619_v39  }
  0x6d   :  { %561 = vperm.xlu1 %1044, %v487_v41  }
  0x71   :  { %566 = vperm.xlu1 %1044, %v622_v40  }
  0x75   :  { %1046 = vset.pattern.permute.xlu1 %v1156_v34 }
  0x76   :  { %690 = vperm.xlu1 %1046, %v486_v35  }
  0x7a   :  { %695 = vperm.xlu1 %1046, %v487_v41  }
  0xae   :  { %v502_v11 = vpop.permute.xlu1 %501 }
  0xb0   :  { %v492_v15 = vpop.permute.xlu0 %491 }
  0xb2   :  { %v507_v12 = vpop.permute.xlu1 %506 }
  0xb4   :  { %v497_v17 = vpop.permute.xlu0 %496 }
  0xb6   :  { %v1320_v13 = vpop.permute.xlu1 %516 }
  0xb8   :  { %v512_v19 = vpop.permute.xlu0 %511 }
  0xba   :  { %v527_v14 = vpop.permute.xlu1 %526 }
  0xbc   :  { %v522_v21 = vpop.permute.xlu0 %521 }
  0xc0   :  { %v1322_v23 = vpop.permute.xlu0 %536 }
  0xc1   :  { %v631_v16 = vpop.permute.xlu1 %630 }
  0xc4   :  { %v1326_v25 = vpop.permute.xlu0 %556 }
  0xc5   :  { %v636_v18 = vpop.permute.xlu1 %635 }
  0xc9   :  { %v646_v20 = vpop.permute.xlu1 %645  ;;  %v626_v27 = vpop.permute.xlu0 %625 }
  0xcd   :  { %v656_v22 = vpop.permute.xlu1 %655  ;;  %v641_v30 = vpop.permute.xlu0 %640 }
  0xd1   :  { %v651_v33 = vpop.permute.xlu0 %650 }
  0xd2   :  { %v1324_v24 = vpop.permute.xlu1 %531 }
  0xd6   :  { %v1328_v26 = vpop.permute.xlu1 %541 }
  0xda   :  { %v1330_v28 = vpop.permute.xlu1 %546 }
  0xdf   :  { %v1332_v29 = vpop.permute.xlu1 %670 }
  0xe3   :  { %v1339_v32 = vpop.permute.xlu1 %675 }
 0x11a   :  { %v964_v42 = vpop.f32.mrb[0].mxu0 }
 0x11b   :  { %v218_v43 = vpop.f32.mrb[1].mxu0 }
 0x11c   :  { %v965_v44 = vpop.f32.mrb[2].mxu0 }
 0x11d   :  { %v282_v45 = vpack.c.bf16 %v965_v44, %v964_v42  ;;  %v221_v46 = vpop.f32.mrb[3].mxu0  ;;  %v1344_v42 = vpop.permute.xlu1 %551 }
 0x11e   :  { %v281_v47 = vpack.c.bf16 %v221_v46, %v218_v43 }
 0x120   :  { %994 = vmatprep.mubr.bf16.mxu1 %v281_v47 }
 0x121   :  { %995 = vmatmul.mubr.bf16.vlgmr.msra.gmra.mrb[0].mxu1 %v282_v45  ;;  %v661_v45 = vpop.permute.xlu0 %660 }
 0x122   :  { %v968_v48 = vpop.f32.mrb[4].mxu0 }
 0x123   :  { %v234_v49 = vpop.f32.mrb[5].mxu0 }
 0x124   :  { %v969_v50 = vpop.f32.mrb[6].mxu0 }
 0x125   :  { %v284_v51 = vpack.c.bf16 %v969_v50, %v968_v48  ;;  %v237_v52 = vpop.f32.mrb[7].mxu0 }
 0x126   :  { %v283_v53 = vpack.c.bf16 %v237_v52, %v234_v49 }
 0x128   :  { %998 = vmatprep.mubr.bf16.mxu1 %v283_v53 }
 0x129   :  { %999 = vmatmul.mubr.bf16.gmra.mrb[4].mxu1 %v284_v51 }
 0x12a   :  { %v972_v54 = vpop.f32.mrb[8].mxu0 }
 0x12b   :  { %v250_v55 = vpop.f32.mrb[9].mxu0 }
 0x12c   :  { %v973_v56 = vpop.f32.mrb[10].mxu0 }
 0x12d   :  { %v286_v57 = vpack.c.bf16 %v973_v56, %v972_v54  ;;  %v253_v58 = vpop.f32.mrb[11].mxu0  ;;  %v1351_v54 = vpop.permute.xlu1 %561 }
 0x12e   :  { %v285_v59 = vpack.c.bf16 %v253_v58, %v250_v55 }
 0x130   :  { %1002 = vmatprep.mubr.bf16.mxu1 %v285_v59 }
 0x131   :  { %1003 = vmatmul.mubr.bf16.gmra.mrb[8].mxu1 %v286_v57 }
 0x132   :  { %v976_v60 = vpop.f32.mrb[12].mxu0 }
 0x133   :  { %v266_v61 = vpop.f32.mrb[13].mxu0 }
 0x134   :  { %v977_v62 = vpop.f32.mrb[14].mxu0 }
 0x135   :  { %v288_v63 = vpack.c.bf16 %v977_v62, %v976_v60  ;;  %v269_v0 = vpop.f32.mrb[15].mxu0 }
 0x136   :  { %v287_v1 = vpack.c.bf16 %v269_v0, %v266_v61  ;;  %v666_v61 = vpop.permute.xlu0 %665 }
 0x138   :  { %1006 = vmatprep.mubr.bf16.mxu1 %v287_v1 }
 0x139   :  { %1007 = vmatmul.mubr.bf16.gmra.mrb[12].mxu1 %v288_v63 }
 0x1f4   :  { %v996_v34 = vpop.f32.mrb[0].mxu1 }
 0x1f5   :  { %v403_v35 = vadd.f32 %v996_v34, %v1337_v31  ;;  %v394_v36 = vpop.f32.mrb[1].mxu1 }
 0x1f6   :  { %v997_v37 = vpop.f32.mrb[2].mxu1  ;;  %v395_v39 = vadd.f32 %v1337_v31, %v394_v36 }
 0x1f7   :  { %v459_v38 = vmax.f32 %v403_v35, 0.0  ;;  %v397_v40 = vpop.f32.mrb[3].mxu1  ;;  %v406_v41 = vadd.f32 %v997_v37, %v1337_v31  ;;  %v567_v35 = vpop.permute.xlu1 %566 }
 0x1f8   :  { %v398_v44 = vadd.f32 %v1337_v31, %v397_v40  ;;  %v457_v46 = vmax.f32 %v395_v39, 0.0 }
 0x1f9   :  { %v1346_v43 = vmul.f32 %v502_v11, %v459_v38  ;;  %v460_v47 = vmax.f32 %v406_v41, 0.0  ;;  %v705_v52 = vmul.f32 %v636_v18, %v459_v38 }
 0x1fa   :  { %v458_v49 = vmax.f32 %v398_v44, 0.0  ;;  %v569_v56 = vmul.f32 %v492_v15, %v457_v46  ;;  %v703_v57 = vmul.f32 %v626_v27, %v457_v46 }
 0x1fb   :  { %v572_v62 = vmul.f32 %v507_v12, %v460_v47  ;;  %v706_v63 = vmul.f32 %v641_v30, %v460_v47 }
 0x1fc   :  { %v1000_v48 = vpop.f32.mrb[4].mxu1  ;;  %v570_v2 = vmul.f32 %v497_v17, %v458_v49  ;;  %v704_v6 = vmul.f32 %v631_v16, %v458_v49 }
 0x1fd   :  { %v419_v50 = vadd.f32 %v1000_v48, %v1337_v31  ;;  %v410_v51 = vpop.f32.mrb[5].mxu1 }
 0x1fe   :  { %v411_v53 = vadd.f32 %v1337_v31, %v410_v51  ;;  %v1001_v55 = vpop.f32.mrb[6].mxu1 }
 0x1ff   :  { %v463_v58 = vmax.f32 %v419_v50, 0.0  ;;  %v422_v59 = vadd.f32 %v1001_v55, %v1337_v31  ;;  %v413_v60 = vpop.f32.mrb[7].mxu1 }
 0x200   :  { %v461_v0 = vmax.f32 %v411_v53, 0.0  ;;  %v414_v1 = vadd.f32 %v1337_v31, %v413_v60 }
 0x201   :  { %v575_v3 = vmul.f32 %v522_v21, %v463_v58  ;;  %v709_v4 = vmul.f32 %v656_v22, %v463_v58  ;;  %v464_v5 = vmax.f32 %v422_v59, 0.0 }
 0x202   :  { %v573_v7 = vmul.f32 %v512_v19, %v461_v0  ;;  %v707_v8 = vmul.f32 %v646_v20, %v461_v0  ;;  %v462_v9 = vmax.f32 %v414_v1, 0.0  ;;  %v681_v19 = vpop.permute.xlu0 %680 }
 0x203   :  { %v587_v10 = vmax.f32 %v1346_v43, %v575_v3  ;;  %v721_v11 = vmax.f32 %v705_v52, %v709_v4  ;;  %v576_v15 = vmul.f32 %v527_v14, %v464_v5  ;;  %v710_v18 = vmul.f32 %v661_v45, %v464_v5 }
 0x204   :  { %v585_v27 = vmax.f32 %v569_v56, %v573_v7  ;;  %v719_v34 = vmax.f32 %v703_v57, %v707_v8  ;;  %v574_v12 = vmul.f32 %v1320_v13, %v462_v9  ;;  %v708_v30 = vmul.f32 %v651_v33, %v462_v9  ;;  %v1004_v36 = vpop.f32.mrb[8].mxu1  ;;  %v691_v33 = vpop.permute.xlu1 %690 }
 0x205   :  { %v588_v17 = vmax.f32 %v572_v62, %v576_v15  ;;  %v722_v21 = vmax.f32 %v706_v63, %v710_v18  ;;  %v435_v22 = vadd.f32 %v1004_v36, %v1337_v31  ;;  %v426_v16 = vpop.f32.mrb[9].mxu1 }
 0x206   :  { %v586_v20 = vmax.f32 %v570_v2, %v574_v12  ;;  %v720_v37 = vmax.f32 %v704_v6, %v708_v30  ;;  %v427_v38 = vadd.f32 %v1337_v31, %v426_v16  ;;  %v1005_v39 = vpop.f32.mrb[10].mxu1  ;;  %v686_v55 = vpop.permute.xlu0 %685 }
 0x207   :  { %v467_v14 = vmax.f32 %v435_v22, 0.0  ;;  %v438_v40 = vadd.f32 %v1005_v39, %v1337_v31  ;;  %v429_v41 = vpop.f32.mrb[11].mxu1 }
 0x208   :  { %v465_v43 = vmax.f32 %v427_v38, 0.0  ;;  %v430_v13 = vadd.f32 %v1337_v31, %v429_v41  ;;  %v696_v1 = vpop.permute.xlu1 %695 }
 0x209   :  { %v579_v44 = vmul.f32 %v1328_v26, %v467_v14  ;;  %v713_v45 = vmul.f32 %v1339_v32, %v467_v14  ;;  %v468_v46 = vmax.f32 %v438_v40, 0.0 }
 0x20a   :  { %v577_v47 = vmul.f32 %v1324_v24, %v465_v43  ;;  %v711_v48 = vmul.f32 %v666_v61, %v465_v43  ;;  %v466_v49 = vmax.f32 %v430_v13, 0.0  ;;  %v701_v8 = vpop.permute.xlu0 %700 }
 0x20b   :  { %v591_v50 = vmax.f32 %v587_v10, %v579_v44  ;;  %v580_v51 = vmul.f32 %v1330_v28, %v468_v46  ;;  %v714_v52 = vmul.f32 %v681_v19, %v468_v46  ;;  %v725_v53 = vmax.f32 %v721_v11, %v713_v45 }
 0x20c   :  { %v589_v56 = vmax.f32 %v585_v27, %v577_v47  ;;  %v723_v57 = vmax.f32 %v719_v34, %v711_v48  ;;  %v578_v58 = vmul.f32 %v1322_v23, %v466_v49  ;;  %v712_v59 = vmul.f32 %v1332_v29, %v466_v49  ;;  %v1008_v26 = vpop.f32.mrb[12].mxu1  ;;  %v896_v49 = vld [vmem:[%s1395_s6] ss:$0 sm:$0xff] }
 0x20d   :  { %v592_v60 = vmax.f32 %v588_v17, %v580_v51  ;;  %v726_v32 = vmax.f32 %v722_v21, %v714_v52  ;;  %v451_v62 = vadd.f32 %v1008_v26, %v1337_v31  ;;  %v442_v24 = vpop.f32.mrb[13].mxu1 }
 0x20e   :  { %v590_v61 = vmax.f32 %v586_v20, %v578_v58  ;;  %v724_v63 = vmax.f32 %v720_v37, %v712_v59  ;;  %v443_v0 = vadd.f32 %v1337_v31, %v442_v24  ;;  %v1009_v28 = vpop.f32.mrb[14].mxu1 }
 0x20f   :  { %v471_v2 = vmax.f32 %v451_v62, 0.0  ;;  %v454_v3 = vadd.f32 %v1009_v28, %v1337_v31  ;;  %v445_v4 = vpop.f32.mrb[15].mxu1 }
 0x210   :  { %v469_v5 = vmax.f32 %v443_v0, 0.0  ;;  %v446_v23 = vadd.f32 %v1337_v31, %v445_v4 }
 0x211   :  { %v583_v29 = vmul.f32 %v1351_v54, %v471_v2  ;;  %v472_v6 = vmax.f32 %v454_v3, 0.0  ;;  %v717_v7 = vmul.f32 %v696_v1, %v471_v2 }
 0x212   :  { %v581_v9 = vmul.f32 %v1344_v42, %v469_v5  ;;  %v715_v10 = vmul.f32 %v686_v55, %v469_v5  ;;  %v470_v11 = vmax.f32 %v446_v23, 0.0 }
 0x213   :  { %v595_v15 = vmax.f32 %v591_v50, %v583_v29  ;;  %v584_v18 = vmul.f32 %v567_v35, %v472_v6  ;;  %v718_v27 = vmul.f32 %v701_v8, %v472_v6  ;;  %v729_v34 = vmax.f32 %v725_v53, %v717_v7 }
 0x214   :  { %v593_v12 = vmax.f32 %v589_v56, %v581_v9  ;;  %v727_v30 = vmax.f32 %v723_v57, %v715_v10  ;;  %v582_v36 = vmul.f32 %v1326_v25, %v470_v11  ;;  %v716_v17 = vmul.f32 %v691_v33, %v470_v11 }
 0x215   :  { %v596_v21 = vmax.f32 %v592_v60, %v584_v18  ;;  %v730_v31 = vmax.f32 %v726_v32, %v718_v27 }
 0x216   :  { %v594_v22 = vmax.f32 %v590_v61, %v582_v36  ;;  %v728_v54 = vmax.f32 %v724_v63, %v716_v17 }
 0x217   :  { %v598_v16 = vmax.f32 %v595_v15, %v596_v21  ;;  %v732_v19 = vmax.f32 %v729_v34, %v730_v31 }
 0x218   :  { %v597_v20 = vmax.f32 %v593_v12, %v594_v22  ;;  %v731_v37 = vmax.f32 %v727_v30, %v728_v54 }
 0x21a   :  { %v599_v42 = vmax.f32 %v597_v20, %v598_v16  ;;  %v733_v38 = vmax.f32 %v731_v37, %v732_v19 }
 0x21c   :  { %v600_v39 = vrot.slane %v599_v42, 4  ;;  %v734_v14 = vrot.slane %v733_v38, 4 }
 0x21e   :  { %v601_v35 = vmax.f32 %v599_v42, %v600_v39  ;;  %v735_v40 = vmax.f32 %v733_v38, %v734_v14 }
 0x220   :  { %v602_v41 = vrot.slane %v601_v35, 2  ;;  %v736_v43 = vrot.slane %v735_v40, 2 }
 0x222   :  { %v603_v13 = vmax.f32 %v601_v35, %v602_v41  ;;  %v737_v44 = vmax.f32 %v735_v40, %v736_v43 }
 0x224   :  { %v604_v25 = vrot.slane %v603_v13, 1  ;;  %v738_v33 = vrot.slane %v737_v44, 1 }
 0x226   :  { %v605_v45 = vmax.f32 %v603_v13, %v604_v25  ;;  %v739_v46 = vmax.f32 %v737_v44, %v738_v33 }
 0x228   :  { %606 = vst [vmem:[#allocation2] sm:$0x1] %v605_v45  ;;  %740 = vst [vmem:[#allocation2 + $0x1] sm:$0x1] %v739_v46 }
 0x22f   :  { %v741_v47 = vld [vmem:[#allocation2] sm:$0x3] }
 0x230   :  { %v742_v48 = vpack.c.bf16 %v741_v47, %v741_v47 }
 0x232   :  { %1027 = vmatmul.mubr.bf16.vlgmr.msra.gmra.mrb[16].mxu0 %v742_v48 }
 0x305   :  { %v848_v50 = vpop.f32.mrb[16].mxu0 }
 0x306   :  { %v849_v51 = vadd.f32 %v896_v49, %v848_v50  ;;  %v1028_v52 = vpop.f32.mrb[17].mxu0 }
 0x307   :  { %v851_v53 = vpop.f32.mrb[18].mxu0 }
 0x308   :  { %854 = vst [vmem:[#allocation8] sm:$0x3] %v849_v51  ;;  %v1029_v55 = vpop.f32.mrb[19].mxu0 }
 0x309   :  { %1134 = shalt.err (!%p1131_p6)
}
 0x30a   :  { %s1135_s6 = scalar_lea.hbm %s1396_s7, 32 }
 0x30b   :  { %p1136_p7 = scmp.ne.s32.totalorder %s1396_s7, %s1135_s6  ;;  %p1139_p8 = scmp.lt.u32.totalorder %s1135_s6, %s1396_s7 }
 0x30d   :  { %p1141_p9 = pnand %p1139_p8, %p1136_p7 }
 0x30f   :  { %1144 = shalt.err (!%p1141_p9)
}
 0x310   :  { %864 = dma.vmem_to_hbm [thread:$0]  %s862_s15, 32, %s1396_s7, [#allocation5]  }
 0x311   :  { %1149 = dma.done.wait [#allocation5], 32  }
 0x312   :  { %1150 = vsyncadd [#allocation5], 4294967264 }
 0x313   :  { %868 = vsyncpa [#allocation4], 1 }
 0x314   :  { %869 = vsyncpa [#allocation7], 1 }
 0x315   :  { %870 = vsyncpa [#allocation5], 1 }

</bundles_post_ra>
